<compile_context>
chip_gen: v7x
topology: tpu7x:2x2x1
jax: 0.10.0
libtpu: 0.0.40
codegen_flags: <defaults>
</compile_context>

<pallas_src>
import functools
import math

import jax
import jax.numpy as jnp
from jax import lax
from jax.experimental import pallas as pl
from jax.experimental.pallas import tpu as pltpu

BN_EPS = 1e-5
LANE = 128
SUBLANE = 8
COORD_PAD = 8                          # pad xyz (3) -> 8 for a sublane-friendly contraction


def _round_up(x: int, m: int) -> int:
    return ((x + m - 1) // m) * m


def _vmem_budget() -> int:
    """Scoped-VMEM budget derived from the chip: ~90-100 MiB on v5e/v6e (128 MiB physical),
    ~45 MiB on v7x (64 MiB physical). Falls back to a v7x-safe value if the query fails."""
    cap = 0
    try:
        cap = int(getattr(pltpu.get_tpu_info(), "vmem_capacity_bytes", 0))
    except Exception:
        cap = 0
    if cap <= 0:
        cap = 64 * 1024 * 1024
    return min(int(cap * 0.70), 100 * 1024 * 1024)


def _cparams(semantics, vmem_limit):
    return pltpu.CompilerParams(
        dimension_semantics=semantics,
        vmem_limit_bytes=int(vmem_limit),
    )


# --------------------------------------------------------------------------- kernels
def _qkv_kernel(x_ref, wq_ref, wk_ref, wv_ref, bq_ref, bk_ref, bv_ref,
                q_ref, k_ref, v_ref):
    # x: (tn, Din) bf16, w*: (Din, Cp) bf16, b*: (1, Cp) f32
    x = x_ref[...]
    q_ref[...] = jnp.dot(x, wq_ref[...],
                         preferred_element_type=jnp.float32) + bq_ref[...]
    k_ref[...] = (jnp.dot(x, wk_ref[...], preferred_element_type=jnp.float32)
                  + bk_ref[...]).astype(k_ref.dtype)
    v_ref[...] = (jnp.dot(x, wv_ref[...], preferred_element_type=jnp.float32)
                  + bv_ref[...]).astype(v_ref.dtype)


def _w_stats_kernel(n_valid, tp, k, nb_half,
                    praw_ref, kg_ref, q_ref, wp_ref, bp_ref,
                    scale1_ref, shift1_ref, ww_ref, bw_ref,
                    wlin_ref, s_ref, ss_ref):
    # praw: (tp*k, 8) f32, kg: (tp, k, cp) bf16, q: (tp, cp) f32, ww: (cp, cp) bf16
    # wlin out: (tp, k, cp) bf16 streamed; s/ss: (1, 8, cp) f32 resident partials
    c = pl.program_id(0)
    i = pl.program_id(1)
    cp = wlin_ref.shape[-1]

    @pl.when(i == 0)
    def _():
        s_ref[...] = jnp.zeros_like(s_ref)
        ss_ref[...] = jnp.zeros_like(ss_ref)

    # recompute p_lin on the fly (contraction = 8, ~free) instead of streaming it from HBM
    p_lin = jnp.dot(praw_ref[...], wp_ref[...],
                    preferred_element_type=jnp.float32) + bp_ref[...]
    p_norm = jnp.maximum(p_lin * scale1_ref[...] + shift1_ref[...], 0.0)
    # w = k * q (implicit broadcast over the k neighbors) + relu(BN1(p))
    w_pre = (kg_ref[...].astype(jnp.float32) * q_ref[...][:, None, :]
             + p_norm.reshape(tp, k, cp)).reshape(tp * k, cp)
    y = jnp.dot(w_pre.astype(ww_ref.dtype), ww_ref[...],
                preferred_element_type=jnp.float32) + bw_ref[...]

    # BN2 statistics: mask rows of padded points, accumulate (8, cp) sublane partials on VPU
    base = (c * nb_half + i) * tp
    row_pt = lax.broadcasted_iota(jnp.int32, (tp * k, 1), 0) // k + base
    ym = jnp.where(row_pt < n_valid, y, 0.0)
    ym3 = ym.reshape(tp * k // SUBLANE, SUBLANE, cp)
    s_ref[...] += jnp.sum(ym3, axis=0)[None]
    ss_ref[...] += jnp.sum(ym3 * ym3, axis=0)[None]

    wlin_ref[...] = y.reshape(tp, k, cp).astype(wlin_ref.dtype)


def _attn_out_kernel(tp, k, praw_ref, wp_ref, bp_ref, wlin_ref, vg_ref,
                     scale1_ref, shift1_ref, scale2_ref, shift2_ref, o_ref):
    # praw: (tp*k, 8) f32, wlin/vg: (tp, k, cp) bf16, scale/shift: (1, cp) f32, o: (tp, cp) f32
    cp = o_ref.shape[-1]
    p_lin = jnp.dot(praw_ref[...], wp_ref[...],
                    preferred_element_type=jnp.float32) + bp_ref[...]
    p_norm = jnp.maximum(p_lin * scale1_ref[...] + shift1_ref[...],
                         0.0).reshape(tp, k, cp)
    w_n = jnp.maximum(wlin_ref[...].astype(jnp.float32) * scale2_ref[...]
                      + shift2_ref[...], 0.0)
    # softmax over the neighbor axis (dim=1 in the PyTorch module)
    m = jnp.max(w_n, axis=1, keepdims=True)
    e = jnp.exp(w_n - m)
    w_soft = e * pl.reciprocal(jnp.sum(e, axis=1, keepdims=True), approx=True)
    o_ref[...] = jnp.sum((vg_ref[...].astype(jnp.float32) + p_norm) * w_soft, axis=1)


# --------------------------------------------------------------------------- params
def prepare_params(raw, out_dim):
    """One-time parameter packing (outside the per-step hot path): pre-transpose to (in, out)
    layout, cast the MXU weight operands to bf16. Small heads (< 128 channels) are NOT
    zero-padded to 128 lanes (full-extent lane blocks) to avoid 4x zero HBM traffic."""
    if out_dim >= LANE:
        cp = _round_up(out_dim, LANE)
    else:
        cp = _round_up(out_dim, SUBLANE)
    in_dim = raw["wq"].shape[1]

    def pad_w(w, rows, cols):
        return jnp.pad(w, ((0, rows - w.shape[0]), (0, cols - w.shape[1])))

    def pad_v(v, m, fill=0.0):
        return jnp.pad(v, (0, m - v.shape[0]), constant_values=fill)

    return {
        "cp": cp,
        "out_dim": out_dim,
        "w_q_t": pad_w(raw["wq"], cp, in_dim).T.astype(jnp.bfloat16),   # (in, cp)
        "w_k_t": pad_w(raw["wk"], cp, in_dim).T.astype(jnp.bfloat16),
        "w_v_t": pad_w(raw["wv"], cp, in_dim).T.astype(jnp.bfloat16),
        "b_q": pad_v(raw["bq"], cp).reshape(1, cp).astype(jnp.float32),
        "b_k": pad_v(raw["bk"], cp).reshape(1, cp).astype(jnp.float32),
        "b_v": pad_v(raw["bv"], cp).reshape(1, cp).astype(jnp.float32),
        "w_p_t": pad_w(raw["wp"], cp, COORD_PAD).T.astype(jnp.float32),  # (8, cp)
        "w_p3": pad_w(raw["wp"], cp, 3).T.astype(jnp.float32),           # (3, cp)
        "b_p": pad_v(raw["bp"], cp).reshape(1, cp).astype(jnp.float32),
        "g1": pad_v(raw["g1"], cp, 1.0).astype(jnp.float32),
        "be1": pad_v(raw["be1"], cp).astype(jnp.float32),
        "w_w_t": pad_w(raw["ww"], cp, cp).T.astype(jnp.bfloat16),        # (cp, cp)
        "b_w": pad_v(raw["bw"], cp).reshape(1, cp).astype(jnp.float32),
        "g2": pad_v(raw["g2"], cp, 1.0).astype(jnp.float32),
        "be2": pad_v(raw["be2"], cp).astype(jnp.float32),
    }


# --------------------------------------------------------------------------- forward
def attention_head_forward(points, neighbors, feats, prep):
    """points: (N,3) f32, neighbors: (N,K) int32 with N == sentinel index,
    feats: (N, in_dim) f32. Returns (N, out_dim) f32."""
    n, k = neighbors.shape
    in_dim = feats.shape[1]
    cp = prep["cp"]
    out_dim = prep["out_dim"]

    vmem_limit = _vmem_budget()

    # ---- tile sizing re-derived from the chip's VMEM (large streaming blocks, v7x-safe)
    per_row = k * (COORD_PAD * 4 + 4 * cp) + 8 * cp          # worst-case streamed bytes/point
    tp = int(vmem_limit * 0.35) // max(1, per_row)
    tp = max(16, min(1024, (tp // 16) * 16))
    tp = min(tp, _round_up(n, 16))
    qkv_per_row = in_dim * 2 + 8 * cp
    tn_rows = max(2 * tp, int(vmem_limit * 0.30) // max(1, qkv_per_row))
    tn_target = min(2048, tn_rows, max(1024, 2 * tp))
    tn = max(1, tn_target // (2 * tp)) * (2 * tp)
    tn = min(tn, _round_up(n, 2 * tp))
    npad = _round_up(n, tn)                                  # multiple of tn and of 2*tp
    nb_half = npad // (2 * tp)

    # ---- 1. fused q/k/v projection (q in f32, k/v emitted bf16, already padded to npad)
    feats_p = jnp.pad(feats, ((0, npad - n), (0, 0))).astype(jnp.bfloat16)
    row_out = pl.BlockSpec((tn, cp), lambda i: (i, 0))
    q, k_feats, v_feats = pl.pallas_call(
        _qkv_kernel,
        out_shape=(jax.ShapeDtypeStruct((npad, cp), jnp.float32),
                   jax.ShapeDtypeStruct((npad, cp), jnp.bfloat16),
                   jax.ShapeDtypeStruct((npad, cp), jnp.bfloat16)),
        grid=(npad // tn,),
        in_specs=[pl.BlockSpec((tn, in_dim), lambda i: (i, 0)),
                  pl.BlockSpec((in_dim, cp), lambda i: (0, 0)),
                  pl.BlockSpec((in_dim, cp), lambda i: (0, 0)),
                  pl.BlockSpec((in_dim, cp), lambda i: (0, 0)),
                  pl.BlockSpec((1, cp), lambda i: (0, 0)),
                  pl.BlockSpec((1, cp), lambda i: (0, 0)),
                  pl.BlockSpec((1, cp), lambda i: (0, 0))],
        out_specs=(row_out, row_out, row_out),
        compiler_params=_cparams(("parallel",), vmem_limit),
    )(feats_p, prep["w_q_t"], prep["w_k_t"], prep["w_v_t"],
      prep["b_q"], prep["b_k"], prep["b_v"])

    # ---- 2. neighbor gather (sentinel index == n -> +1e6 coords / zero k,v), bf16 k/v
    # TODO(synk): fusing this data-dependent gather into the Pallas passes needs per-row
    # manual DMA (PrefetchScalarGridSpec + make_async_copy); at cp*2 bytes per row the DMA
    # descriptors are too small to beat the XLA gather, so it stays in XLA.
    nbr = jnp.minimum(neighbors, n - 1).astype(jnp.int32)
    sent = (neighbors >= n)[..., None]
    p_g = jnp.where(sent, jnp.float32(1e6), points.astype(jnp.float32)[nbr])
    k_g = jnp.where(sent, jnp.bfloat16(0.0), k_feats[nbr])
    v_g = jnp.where(sent, jnp.bfloat16(0.0), v_feats[nbr])

    # ---- 3. BN1 statistics from raw coordinate moments (no p_lin materialization):
    #         mean(p_lin) = mean(x) @ Wp + b,  var(p_lin)_c = w_c^T Cov(x) w_c
    m_valid = float(n * k)
    p_flat = p_g.reshape(n * k, 3)
    mean_x = jnp.mean(p_flat, axis=0)
    xc = p_flat - mean_x
    cov = jnp.dot(xc.T, xc, preferred_element_type=jnp.float32) / m_valid
    wp3 = prep["w_p3"]
    mean1 = jnp.dot(mean_x, wp3) + prep["b_p"][0]
    var1 = jnp.maximum(jnp.einsum("ic,ij,jc->c", wp3, cov, wp3), 0.0)
    inv1 = lax.rsqrt(var1 + BN_EPS)
    scale1 = (prep["g1"] * inv1).reshape(1, cp)
    shift1 = (prep["be1"] - mean1 * prep["g1"] * inv1).reshape(1, cp)

    # ---- 4. pad point axis to npad and lay out the per-neighbor arrays
    def pad_pts(a):
        return jnp.pad(a, ((0, npad - n),) + ((0, 0),) * (a.ndim - 1))

    p_raw2d = jnp.pad(p_g, ((0, npad - n), (0, 0), (0, COORD_PAD - 3))
                      ).reshape(npad * k, COORD_PAD)
    k_g3 = pad_pts(k_g)                                       # (npad, k, cp) bf16
    v_g3 = pad_pts(v_g)

    def t_nk(c, i):       # (npad*k, *) flat rows
        return (c * nb_half + i, 0)

    def t_pt3(c, i):      # (npad, k, cp)
        return (c * nb_half + i, 0, 0)

    def t_pt2(c, i):      # (npad, cp)
        return (c * nb_half + i, 0)

    def t_const(c, i):
        return (0, 0)

    def t_acc(c, i):
        return (c, 0, 0)

    # ---- 5. w = k*q + relu(BN1(p)); w_proj linear + BN2 stats (2-way core-parallel split)
    w_lin3, s2, ss2 = pl.pallas_call(
        functools.partial(_w_stats_kernel, n, tp, k, nb_half),
        out_shape=(jax.ShapeDtypeStruct((npad, k, cp), jnp.bfloat16),
                   jax.ShapeDtypeStruct((2, SUBLANE, cp), jnp.float32),
                   jax.ShapeDtypeStruct((2, SUBLANE, cp), jnp.float32)),
        grid=(2, nb_half),
        in_specs=[pl.BlockSpec((tp * k, COORD_PAD), t_nk),
                  pl.BlockSpec((tp, k, cp), t_pt3),
                  pl.BlockSpec((tp, cp), t_pt2),
                  pl.BlockSpec((COORD_PAD, cp), t_const),
                  pl.BlockSpec((1, cp), t_const),
                  pl.BlockSpec((1, cp), t_const),
                  pl.BlockSpec((1, cp), t_const),
                  pl.BlockSpec((cp, cp), t_const),
                  pl.BlockSpec((1, cp), t_const)],
        out_specs=(pl.BlockSpec((tp, k, cp), t_pt3),
                   pl.BlockSpec((1, SUBLANE, cp), t_acc),
                   pl.BlockSpec((1, SUBLANE, cp), t_acc)),
        compiler_params=_cparams(("parallel", "arbitrary"), vmem_limit),
    )(p_raw2d, k_g3, q, prep["w_p_t"], prep["b_p"], scale1, shift1,
      prep["w_w_t"], prep["b_w"])

    mean2 = jnp.sum(s2, axis=(0, 1)) / m_valid
    var2 = jnp.maximum(jnp.sum(ss2, axis=(0, 1)) / m_valid - mean2 * mean2, 0.0)
    inv2 = lax.rsqrt(var2 + BN_EPS)
    scale2 = (prep["g2"] * inv2).reshape(1, cp)
    shift2 = (prep["be2"] - mean2 * prep["g2"] * inv2).reshape(1, cp)

    # ---- 6. BN2 + ReLU + softmax over neighbors + weighted neighborhood sum
    att = pl.pallas_call(
        functools.partial(_attn_out_kernel, tp, k),
        out_shape=jax.ShapeDtypeStruct((npad, cp), jnp.float32),
        grid=(npad // tp,),
        in_specs=[pl.BlockSpec((tp * k, COORD_PAD), lambda i: (i, 0)),
                  pl.BlockSpec((COORD_PAD, cp), lambda i: (0, 0)),
                  pl.BlockSpec((1, cp), lambda i: (0, 0)),
                  pl.BlockSpec((tp, k, cp), lambda i: (i, 0, 0)),
                  pl.BlockSpec((tp, k, cp), lambda i: (i, 0, 0)),
                  pl.BlockSpec((1, cp), lambda i: (0, 0)),
                  pl.BlockSpec((1, cp), lambda i: (0, 0)),
                  pl.BlockSpec((1, cp), lambda i: (0, 0)),
                  pl.BlockSpec((1, cp), lambda i: (0, 0))],
        out_specs=pl.BlockSpec((tp, cp), lambda i: (i, 0)),
        compiler_params=_cparams(("parallel",), vmem_limit),
    )(p_raw2d, prep["w_p_t"], prep["b_p"], w_lin3, v_g3,
      scale1, shift1, scale2, shift2)

    return att[:n, :out_dim]


# --------------------------------------------------------------------------- reference
def reference(points, neighbors, feats, raw):
    """Pure-JAX mirror of the PyTorch forward (training-mode BN, biased variance). Matmul
    inputs and the streamed k/v/w_lin intermediates are cast to bf16 exactly like the
    kernels so the comparison checks plumbing rather than bf16 rounding."""
    n, k = neighbors.shape
    f16 = feats.astype(jnp.bfloat16)

    def lin(x, w, b):
        return jnp.dot(x, w.T.astype(jnp.bfloat16),
                       preferred_element_type=jnp.float32) + b

    q = lin(f16, raw["wq"], raw["bq"])
    kf = lin(f16, raw["wk"], raw["bk"]).astype(jnp.bfloat16)
    vf = lin(f16, raw["wv"], raw["bv"]).astype(jnp.bfloat16)
    points_p = jnp.concatenate([points, jnp.full((1, 3), 1e6, jnp.float32)], 0)
    kf = jnp.concatenate([kf, jnp.zeros((1, kf.shape[1]), jnp.bfloat16)], 0)
    vf = jnp.concatenate([vf, jnp.zeros((1, vf.shape[1]), jnp.bfloat16)], 0)
    p_g = points_p[neighbors]
    k_g = kf[neighbors].astype(jnp.float32)
    v_g = vf[neighbors].astype(jnp.float32)

    p_lin = jnp.einsum("nkc,dc->nkd", p_g, raw["wp"]) + raw["bp"]
    mean1 = p_lin.mean((0, 1))
    var1 = ((p_lin - mean1) ** 2).mean((0, 1))
    p_n = jax.nn.relu((p_lin - mean1) / jnp.sqrt(var1 + BN_EPS) * raw["g1"] + raw["be1"])

    w_pre = k_g * q[:, None, :] + p_n
    w_lin = (jnp.dot(w_pre.reshape(n * k, -1).astype(jnp.bfloat16),
                     raw["ww"].T.astype(jnp.bfloat16),
                     preferred_element_type=jnp.float32) + raw["bw"]).reshape(n, k, -1)
    mean2 = w_lin.mean((0, 1))
    var2 = ((w_lin - mean2) ** 2).mean((0, 1))
    w_lin = w_lin.astype(jnp.bfloat16).astype(jnp.float32)   # mirrors bf16 streaming
    w_n = jax.nn.relu((w_lin - mean2) / jnp.sqrt(var2 + BN_EPS) * raw["g2"] + raw["be2"])
    w_soft = jax.nn.softmax(w_n, axis=1)
    return ((v_g + p_n) * w_soft).sum(1)


# --------------------------------------------------------------------------- main
if __name__ == "__main__":
    N, K = 64, 16
    in_dim, out_dim = 32, 32

    keys = jax.random.split(jax.random.PRNGKey(0), 16)
    points = jax.random.normal(keys[0], (N, 3), jnp.float32)
    feats = jax.random.normal(keys[1], (N, in_dim), jnp.float32)
    neighbors = jax.random.randint(keys[2], (N, K), 0, N)
    # a few "missing" neighbors hit the sentinel row (index == N), as in the torch module
    neighbors = neighbors.at[:4, -1].set(N)

    def linear_init(kw, kb, fan_out, fan_in):
        bound = 1.0 / math.sqrt(fan_in)
        w = jax.random.uniform(kw, (fan_out, fan_in), jnp.float32, -bound, bound)
        b = jax.random.uniform(kb, (fan_out,), jnp.float32, -bound, bound)
        return w, b

    wq, bq = linear_init(keys[3], keys[4], out_dim, in_dim)
    wk, bk = linear_init(keys[5], keys[6], out_dim, in_dim)
    wv, bv = linear_init(keys[7], keys[8], out_dim, in_dim)
    wp, bp = linear_init(keys[9], keys[10], out_dim, 3)
    ww, bw = linear_init(keys[11], keys[12], out_dim, out_dim)
    g1 = jax.random.uniform(keys[13], (out_dim,), jnp.float32, 0.8, 1.2)
    be1 = 0.1 * jax.random.normal(keys[14], (out_dim,), jnp.float32)
    g2 = jax.random.uniform(keys[15], (out_dim,), jnp.float32, 0.8, 1.2)
    be2 = 0.05 * jax.random.normal(keys[0], (out_dim,), jnp.float32)

    raw = dict(wq=wq, bq=bq, wk=wk, bk=bk, wv=wv, bv=bv,
               wp=wp, bp=bp, g1=g1, be1=be1, ww=ww, bw=bw, g2=g2, be2=be2)

    prep = prepare_params(raw, out_dim)
    out = attention_head_forward(points, neighbors, feats, prep)
    jax.block_until_ready(out)

    ref = reference(points, neighbors, feats, raw)
    assert out.shape == (N, out_dim)
    err = float(jnp.max(jnp.abs(out - ref)))
    tol = 5e-3 * (1.0 + float(jnp.max(jnp.abs(ref))))
    assert err <= tol, f"mismatch vs reference: max abs err {err} > tol {tol}"
    print("KERNEL_OK")
</pallas_src>

<mosaic_0001>
module attributes {stable_mosaic.version = 11 : i64} {
  func.func @_qkv_kernel(%arg0: i32, %arg1: memref<128x32xbf16, #tpu.memory_space<vmem>>, %arg2: memref<32x32xbf16, #tpu.memory_space<vmem>>, %arg3: memref<32x32xbf16, #tpu.memory_space<vmem>>, %arg4: memref<32x32xbf16, #tpu.memory_space<vmem>>, %arg5: memref<1x32xf32, #tpu.memory_space<vmem>>, %arg6: memref<1x32xf32, #tpu.memory_space<vmem>>, %arg7: memref<1x32xf32, #tpu.memory_space<vmem>>, %arg8: memref<128x32xf32, #tpu.memory_space<vmem>>, %arg9: memref<128x32xbf16, #tpu.memory_space<vmem>>, %arg10: memref<128x32xbf16, #tpu.memory_space<vmem>>) attributes {dimension_semantics = [#tpu.dimension_semantics<parallel>], iteration_bounds = array<i64: 1>, scalar_prefetch = 0 : i64, scratch_operands = 0 : i64, tpu.core_type = #tpu.core_type<tc>, window_params = [{transform_indices = @transform_0, window_bounds = array<i64: 128, 32>}, {pipeline_mode = #tpu.pipeline_mode<synchronous>, transform_indices = @transform_1, window_bounds = array<i64: 32, 32>}, {pipeline_mode = #tpu.pipeline_mode<synchronous>, transform_indices = @transform_2, window_bounds = array<i64: 32, 32>}, {pipeline_mode = #tpu.pipeline_mode<synchronous>, transform_indices = @transform_3, window_bounds = array<i64: 32, 32>}, {pipeline_mode = #tpu.pipeline_mode<synchronous>, transform_indices = @transform_4, window_bounds = array<i64: 1, 32>}, {pipeline_mode = #tpu.pipeline_mode<synchronous>, transform_indices = @transform_5, window_bounds = array<i64: 1, 32>}, {pipeline_mode = #tpu.pipeline_mode<synchronous>, transform_indices = @transform_6, window_bounds = array<i64: 1, 32>}, {transform_indices = @transform_7, window_bounds = array<i64: 128, 32>}, {transform_indices = @transform_8, window_bounds = array<i64: 128, 32>}, {transform_indices = @transform_9, window_bounds = array<i64: 128, 32>}]} {
    %c0 = arith.constant 0 : index
    %c0_0 = arith.constant 0 : index
    %0 = vector.load %arg1[%c0, %c0_0] : memref<128x32xbf16, #tpu.memory_space<vmem>>, vector<128x32xbf16>
    %c0_1 = arith.constant 0 : index
    %c0_2 = arith.constant 0 : index
    %1 = vector.load %arg2[%c0_1, %c0_2] : memref<32x32xbf16, #tpu.memory_space<vmem>>, vector<32x32xbf16>
    %cst = arith.constant dense<0.000000e+00> : vector<128x32xf32>
    %2 = tpu.matmul %0, %1, %cst {dimension_numbers = #tpu.dot_dimension_numbers<[1], [0], [0], [1], [0, 0, 1, 1], [], []>} : vector<128x32xbf16>, vector<32x32xbf16>, vector<128x32xf32> -> vector<128x32xf32>
    %c0_3 = arith.constant 0 : index
    %c0_4 = arith.constant 0 : index
    %3 = vector.load %arg5[%c0_3, %c0_4] : memref<1x32xf32, #tpu.memory_space<vmem>>, vector<1x32xf32>
    %4 = vector.broadcast %3 : vector<1x32xf32> to vector<128x32xf32>
    %5 = arith.addf %2, %4 : vector<128x32xf32>
    %c0_5 = arith.constant 0 : index
    %c0_6 = arith.constant 0 : index
    %6 = vector.load %arg8[%c0_5, %c0_6] : memref<128x32xf32, #tpu.memory_space<vmem>>, vector<128x32xf32>
    tpu.vector_store %arg8[%c0_5, %c0_6], %5 {strides = array<i32>} : memref<128x32xf32, #tpu.memory_space<vmem>>, vector<128x32xf32>,
    %c0_7 = arith.constant 0 : index
    %c0_8 = arith.constant 0 : index
    %7 = vector.load %arg3[%c0_7, %c0_8] : memref<32x32xbf16, #tpu.memory_space<vmem>>, vector<32x32xbf16>
    %cst_9 = arith.constant dense<0.000000e+00> : vector<128x32xf32>
    %8 = tpu.matmul %0, %7, %cst_9 {dimension_numbers = #tpu.dot_dimension_numbers<[1], [0], [0], [1], [0, 0, 1, 1], [], []>} : vector<128x32xbf16>, vector<32x32xbf16>, vector<128x32xf32> -> vector<128x32xf32>
    %c0_10 = arith.constant 0 : index
    %c0_11 = arith.constant 0 : index
    %9 = vector.load %arg6[%c0_10, %c0_11] : memref<1x32xf32, #tpu.memory_space<vmem>>, vector<1x32xf32>
    %10 = vector.broadcast %9 : vector<1x32xf32> to vector<128x32xf32>
    %11 = arith.addf %8, %10 : vector<128x32xf32>
    %12 = arith.truncf %11 : vector<128x32xf32> to vector<128x32xbf16>
    %c0_12 = arith.constant 0 : index
    %c0_13 = arith.constant 0 : index
    %13 = vector.load %arg9[%c0_12, %c0_13] : memref<128x32xbf16, #tpu.memory_space<vmem>>, vector<128x32xbf16>
    tpu.vector_store %arg9[%c0_12, %c0_13], %12 {strides = array<i32>} : memref<128x32xbf16, #tpu.memory_space<vmem>>, vector<128x32xbf16>,
    %c0_14 = arith.constant 0 : index
    %c0_15 = arith.constant 0 : index
    %14 = vector.load %arg4[%c0_14, %c0_15] : memref<32x32xbf16, #tpu.memory_space<vmem>>, vector<32x32xbf16>
    %cst_16 = arith.constant dense<0.000000e+00> : vector<128x32xf32>
    %15 = tpu.matmul %0, %14, %cst_16 {dimension_numbers = #tpu.dot_dimension_numbers<[1], [0], [0], [1], [0, 0, 1, 1], [], []>} : vector<128x32xbf16>, vector<32x32xbf16>, vector<128x32xf32> -> vector<128x32xf32>
    %c0_17 = arith.constant 0 : index
    %c0_18 = arith.constant 0 : index
    %16 = vector.load %arg7[%c0_17, %c0_18] : memref<1x32xf32, #tpu.memory_space<vmem>>, vector<1x32xf32>
    %17 = vector.broadcast %16 : vector<1x32xf32> to vector<128x32xf32>
    %18 = arith.addf %15, %17 : vector<128x32xf32>
    %19 = arith.truncf %18 : vector<128x32xf32> to vector<128x32xbf16>
    %c0_19 = arith.constant 0 : index
    %c0_20 = arith.constant 0 : index
    %20 = vector.load %arg10[%c0_19, %c0_20] : memref<128x32xbf16, #tpu.memory_space<vmem>>, vector<128x32xbf16>
    tpu.vector_store %arg10[%c0_19, %c0_20], %19 {strides = array<i32>} : memref<128x32xbf16, #tpu.memory_space<vmem>>, vector<128x32xbf16>,
    return
  }
  func.func @transform_0(%arg0: i32) -> (i32, i32) {
    %c0_i32 = arith.constant 0 : i32
    %c0_i32_0 = arith.constant 0 : i32
    return %arg0, %c0_i32 : i32, i32
  }
  func.func @transform_1(%arg0: i32) -> (i32, i32) {
    %c0_i32 = arith.constant 0 : i32
    %c0_i32_0 = arith.constant 0 : i32
    %c0_i32_1 = arith.constant 0 : i32
    return %c0_i32, %c0_i32_0 : i32, i32
  }
  func.func @transform_2(%arg0: i32) -> (i32, i32) {
    %c0_i32 = arith.constant 0 : i32
    %c0_i32_0 = arith.constant 0 : i32
    %c0_i32_1 = arith.constant 0 : i32
    return %c0_i32, %c0_i32_0 : i32, i32
  }
  func.func @transform_3(%arg0: i32) -> (i32, i32) {
    %c0_i32 = arith.constant 0 : i32
    %c0_i32_0 = arith.constant 0 : i32
    %c0_i32_1 = arith.constant 0 : i32
    return %c0_i32, %c0_i32_0 : i32, i32
  }
  func.func @transform_4(%arg0: i32) -> (i32, i32) {
    %c0_i32 = arith.constant 0 : i32
    %c0_i32_0 = arith.constant 0 : i32
    %c0_i32_1 = arith.constant 0 : i32
    return %c0_i32, %c0_i32_0 : i32, i32
  }
  func.func @transform_5(%arg0: i32) -> (i32, i32) {
    %c0_i32 = arith.constant 0 : i32
    %c0_i32_0 = arith.constant 0 : i32
    %c0_i32_1 = arith.constant 0 : i32
    return %c0_i32, %c0_i32_0 : i32, i32
  }
  func.func @transform_6(%arg0: i32) -> (i32, i32) {
    %c0_i32 = arith.constant 0 : i32
    %c0_i32_0 = arith.constant 0 : i32
    %c0_i32_1 = arith.constant 0 : i32
    return %c0_i32, %c0_i32_0 : i32, i32
  }
  func.func @transform_7(%arg0: i32) -> (i32, i32) {
    %c0_i32 = arith.constant 0 : i32
    %c0_i32_0 = arith.constant 0 : i32
    return %arg0, %c0_i32 : i32, i32
  }
  func.func @transform_8(%arg0: i32) -> (i32, i32) {
    %c0_i32 = arith.constant 0 : i32
    %c0_i32_0 = arith.constant 0 : i32
    return %arg0, %c0_i32 : i32, i32
  }
  func.func @transform_9(%arg0: i32) -> (i32, i32) {
    %c0_i32 = arith.constant 0 : i32
    %c0_i32_0 = arith.constant 0 : i32
    return %arg0, %c0_i32 : i32, i32
  }
}

</mosaic_0001>

<bundles_post_ra>
// kernel: tpu_custom_call.1
= control target key start
LH: loop header
LB: loop body
LE: loop exit
PB: predicated region body
PF: predicated region fallthrough
CT: control target
= control target key end

     0   :  { %vm109_vm0 = vcmask 261120   ;;  %vm431_vm1 = vcmask 257024   ;;  %s1226_s1 = inlined_call_operand.vmem [shape: bf16[32,32], index: 1, kind: input, shape index: {}]   ;;  %s1227_s0 = inlined_call_operand.vmem [shape: bf16[128,32], index: 0, kind: input, shape index: {}]   ;;  %s1228_s2 = inlined_call_operand.vmem [shape: bf16[32,32], index: 2, kind: input, shape index: {}]   ;;  %s1229_s3 = inlined_call_operand.vmem [shape: bf16[32,32], index: 3, kind: input, shape index: {}]   ;;  %s1230_s4 = inlined_call_operand.vmem [shape: f32[1,32], index: 4, kind: input, shape index: {}]   ;;  %s1231_s7 = inlined_call_operand.vmem [shape: f32[128,32], index: 7, kind: output, shape index: {0}]   ;;  %s1232_s5 = inlined_call_operand.vmem [shape: f32[1,32], index: 5, kind: input, shape index: {}]   ;;  %s1233_s6 = inlined_call_operand.vmem [shape: f32[1,32], index: 6, kind: input, shape index: {}]   ;;  %s1234_s8 = inlined_call_operand.vmem [shape: bf16[128,32], index: 8, kind: output, shape index: {1}]   ;;  %s1235_s9 = inlined_call_operand.vmem [shape: bf16[128,32], index: 9, kind: output, shape index: {2}]  }
   0x1   :  { %v859_v0 = vld [vmem:[%s1226_s1] sm:$0xff]   ;;  %v860_v1 = vld [vmem:[%s1226_s1 + $0x8] sm:$0xff]   ;;  %v867_v8 = vld [vmem:[%s1227_s0 + $0x10] sm:$0xff]  }
   0x2   :  { %795 = vmatprep.subr.bf16.mxu0 %v859_v0  ;;  %855 = vmatprep.subr.bf16.mxu1 %v859_v0  ;;  %v861_v2 = vld [vmem:[%s1227_s0] sm:$0xff]   ;;  %v863_v4 = vld [vmem:[%s1227_s0 + $0x8] sm:$0xff]   ;;  %v868_v9 = vld [vmem:[%s1227_s0 + $0x30] sm:$0xff]  }
   0x3   :  { %796 = vmatpush3.bf16.msra.mxu0 %v859_v0  ;;  %857 = vmatpush3.bf16.msra.mxu1 %v859_v0  ;;  %v862_v3 = vld [vmem:[%s1227_s0 + $0x20] sm:$0xff]   ;;  %v864_v5 = vld [vmem:[%s1227_s0 + $0x28] sm:$0xff]   ;;  %v869_v12 = vld [vmem:[%s1227_s0 + $0x18] sm:$0xff]  }
   0x4   :  { %797 = vmatprep.subr.bf16.mxu0 %v860_v1  ;;  %856 = vmatprep.subr.bf16.mxu1 %v860_v1  ;;  %v865_v6 = vld [vmem:[%s1228_s2] sm:$0xff]   ;;  %v871_v10 = vld [vmem:[%s1228_s2 + $0x8] sm:$0xff]   ;;  %v870_v13 = vld [vmem:[%s1227_s0 + $0x38] sm:$0xff]  }
   0x5   :  { %799 = vmatprep.mubr.msk.bf16.mxu0 %vm109_vm0, %v861_v2  ;;  %807 = vmatprep.mubr.msk.bf16.mxu1 %vm109_vm0, %v862_v3  ;;  %v866_v7 = vld [vmem:[%s1229_s3] sm:$0xff]   ;;  %v872_v11 = vld [vmem:[%s1229_s3 + $0x8] sm:$0xff]  }
   0x6   :  { %v660_v14 = vld [vmem:[%s1230_s4] ss:$0 sm:$0xff] }
   0x7   :  { %798 = vmatpush3.bf16.msra.mxu0 %v860_v1  ;;  %858 = vmatpush3.bf16.msra.mxu1 %v860_v1  ;;  %v1059_v47 = vld [vmem:[%s1232_s5] ss:$0 sm:$0xff] }
   0x8   :  { %815 = vmatprep.subr.bf16.mxu1 %v865_v6  ;;  %835 = vmatprep.subr.bf16.mxu0 %v866_v7  ;;  %v1064_v48 = vld [vmem:[%s1233_s6] ss:$0 sm:$0xff] }
   0xa   :  { %800 = vmatmul.mubr.msk.bf16.vlgmr.msra.gmra.mrb[0].mxu0 %vm109_vm0, %v863_v4  ;;  %808 = vmatmul.mubr.msk.bf16.vlgmr.msra.gmra.mrb[0].mxu1 %vm109_vm0, %v864_v5 }
   0xb   :  { %816 = vmatpush3.bf16.msra.mxu1 %v865_v6  ;;  %836 = vmatpush3.bf16.msra.mxu0 %v866_v7 }
   0xc   :  { %803 = vmatprep.mubr.msk.bf16.mxu0 %vm109_vm0, %v867_v8  ;;  %811 = vmatprep.mubr.msk.bf16.mxu1 %vm109_vm0, %v868_v9 }
   0xd   :  { %817 = vmatprep.subr.bf16.mxu1 %v871_v10  ;;  %837 = vmatprep.subr.bf16.mxu0 %v872_v11 }
   0xf   :  { %818 = vmatpush3.bf16.msra.mxu1 %v871_v10  ;;  %838 = vmatpush3.bf16.msra.mxu0 %v872_v11 }
  0x12   :  { %804 = vmatmul.mubr.msk.bf16.gmra.mrb[4].mxu0 %vm109_vm0, %v869_v12  ;;  %812 = vmatmul.mubr.msk.bf16.gmra.mrb[4].mxu1 %vm109_vm0, %v870_v13 }
  0x13   :  { %819 = vmatprep.mubr.msk.bf16.mxu1 %vm109_vm0, %v861_v2  ;;  %839 = vmatprep.mubr.msk.bf16.mxu0 %vm109_vm0, %v861_v2 }
  0x1a   :  { %820 = vmatmul.mubr.msk.bf16.vlgmr.msra.gmra.mrb[8].mxu1 %vm109_vm0, %v863_v4  ;;  %840 = vmatmul.mubr.msk.bf16.vlgmr.msra.gmra.mrb[8].mxu0 %vm109_vm0, %v863_v4 }
  0x1b   :  { %823 = vmatprep.mubr.msk.bf16.mxu1 %vm109_vm0, %v867_v8  ;;  %843 = vmatprep.mubr.msk.bf16.mxu0 %vm109_vm0, %v867_v8 }
  0x22   :  { %824 = vmatmul.mubr.msk.bf16.gmra.mrb[12].mxu1 %vm109_vm0, %v869_v12  ;;  %844 = vmatmul.mubr.msk.bf16.gmra.mrb[12].mxu0 %vm109_vm0, %v869_v12 }
  0x23   :  { %827 = vmatprep.mubr.msk.bf16.mxu1 %vm109_vm0, %v862_v3  ;;  %847 = vmatprep.mubr.msk.bf16.mxu0 %vm109_vm0, %v862_v3 }
  0x2a   :  { %828 = vmatmul.mubr.msk.bf16.gmra.mrb[16].mxu1 %vm109_vm0, %v864_v5  ;;  %848 = vmatmul.mubr.msk.bf16.gmra.mrb[16].mxu0 %vm109_vm0, %v864_v5 }
  0x2b   :  { %831 = vmatprep.mubr.msk.bf16.mxu1 %vm109_vm0, %v868_v9  ;;  %851 = vmatprep.mubr.msk.bf16.mxu0 %vm109_vm0, %v868_v9 }
  0x32   :  { %832 = vmatmul.mubr.msk.bf16.gmra.mrb[20].mxu1 %vm109_vm0, %v870_v13  ;;  %852 = vmatmul.mubr.msk.bf16.gmra.mrb[20].mxu0 %vm109_vm0, %v870_v13 }
  0xdd   :  { %v801_v15 = vpop.f32.mrb[0].mxu0  ;;  %v809_v16 = vpop.f32.mrb[0].mxu1 }
  0xde   :  { %v177_v17 = vadd.f32 %v801_v15, %v660_v14  ;;  %v209_v18 = vadd.f32 %v809_v16, %v660_v14  ;;  %v168_v19 = vpop.f32.mrb[1].mxu0  ;;  %v200_v20 = vpop.f32.mrb[1].mxu1 }
  0xdf   :  { %v169_v21 = vadd.f32 %v660_v14, %v168_v19  ;;  %v201_v22 = vadd.f32 %v660_v14, %v200_v20  ;;  %v802_v23 = vpop.f32.mrb[2].mxu0  ;;  %v810_v24 = vpop.f32.mrb[2].mxu1 }
  0xe0   :  { %233 = vst.msk [vmem:[%s1231_s7 + $0x10] sm:$0xff] %vm109_vm0, %v177_v17  ;;  %241 = vst.msk [vmem:[%s1231_s7 + $0x50] sm:$0xff] %vm109_vm0, %v209_v18  ;;  %v180_v25 = vadd.f32 %v802_v23, %v660_v14  ;;  %v212_v26 = vadd.f32 %v810_v24, %v660_v14  ;;  %v171_v27 = vpop.f32.mrb[3].mxu0  ;;  %v203_v28 = vpop.f32.mrb[3].mxu1 }
  0xe1   :  { %231 = vst.msk [vmem:[%s1231_s7] sm:$0xff] %vm109_vm0, %v169_v21  ;;  %239 = vst.msk [vmem:[%s1231_s7 + $0x40] sm:$0xff] %vm109_vm0, %v201_v22  ;;  %v172_v29 = vadd.f32 %v660_v14, %v171_v27  ;;  %v204_v30 = vadd.f32 %v660_v14, %v203_v28 }
  0xe2   :  { %234 = vst.msk [vmem:[%s1231_s7 + $0x18] sm:$0xff] %vm109_vm0, %v180_v25  ;;  %242 = vst.msk [vmem:[%s1231_s7 + $0x58] sm:$0xff] %vm109_vm0, %v212_v26 }
  0xe3   :  { %232 = vst.msk [vmem:[%s1231_s7 + $0x8] sm:$0xff] %vm109_vm0, %v172_v29  ;;  %240 = vst.msk [vmem:[%s1231_s7 + $0x48] sm:$0xff] %vm109_vm0, %v204_v30 }
  0xe5   :  { %v805_v31 = vpop.f32.mrb[4].mxu0  ;;  %v813_v32 = vpop.f32.mrb[4].mxu1 }
  0xe6   :  { %v193_v33 = vadd.f32 %v805_v31, %v660_v14  ;;  %v225_v34 = vadd.f32 %v813_v32, %v660_v14  ;;  %v184_v35 = vpop.f32.mrb[5].mxu0  ;;  %v216_v36 = vpop.f32.mrb[5].mxu1 }
  0xe7   :  { %v185_v37 = vadd.f32 %v660_v14, %v184_v35  ;;  %v217_v38 = vadd.f32 %v660_v14, %v216_v36  ;;  %v806_v39 = vpop.f32.mrb[6].mxu0  ;;  %v814_v40 = vpop.f32.mrb[6].mxu1 }
  0xe8   :  { %237 = vst.msk [vmem:[%s1231_s7 + $0x30] sm:$0xff] %vm109_vm0, %v193_v33  ;;  %245 = vst.msk [vmem:[%s1231_s7 + $0x70] sm:$0xff] %vm109_vm0, %v225_v34  ;;  %v196_v41 = vadd.f32 %v806_v39, %v660_v14  ;;  %v228_v42 = vadd.f32 %v814_v40, %v660_v14  ;;  %v187_v43 = vpop.f32.mrb[7].mxu0  ;;  %v219_v44 = vpop.f32.mrb[7].mxu1 }
  0xe9   :  { %235 = vst.msk [vmem:[%s1231_s7 + $0x20] sm:$0xff] %vm109_vm0, %v185_v37  ;;  %243 = vst.msk [vmem:[%s1231_s7 + $0x60] sm:$0xff] %vm109_vm0, %v217_v38  ;;  %v188_v45 = vadd.f32 %v660_v14, %v187_v43  ;;  %v220_v46 = vadd.f32 %v660_v14, %v219_v44 }
  0xea   :  { %238 = vst.msk [vmem:[%s1231_s7 + $0x38] sm:$0xff] %vm109_vm0, %v196_v41  ;;  %246 = vst.msk [vmem:[%s1231_s7 + $0x78] sm:$0xff] %vm109_vm0, %v228_v42 }
  0xeb   :  { %236 = vst.msk [vmem:[%s1231_s7 + $0x28] sm:$0xff] %vm109_vm0, %v188_v45  ;;  %244 = vst.msk [vmem:[%s1231_s7 + $0x68] sm:$0xff] %vm109_vm0, %v220_v46 }
  0xed   :  { %v821_v49 = vpop.f32.mrb[8].mxu1  ;;  %v841_v50 = vpop.f32.mrb[8].mxu0 }
  0xee   :  { %v313_v51 = vadd.f32 %v821_v49, %v1059_v47  ;;  %v514_v52 = vadd.f32 %v841_v50, %v1064_v48  ;;  %v304_v53 = vpop.f32.mrb[9].mxu1  ;;  %v505_v54 = vpop.f32.mrb[9].mxu0 }
  0xef   :  { %v305_v55 = vadd.f32 %v1059_v47, %v304_v53  ;;  %v506_v56 = vadd.f32 %v1064_v48, %v505_v54  ;;  %v822_v57 = vpop.f32.mrb[10].mxu1  ;;  %v842_v58 = vpop.f32.mrb[10].mxu0 }
  0xf0   :  { %v735_v59 = vpack.c.bf16 %v313_v51, %v313_v51  ;;  %v751_v60 = vpack.c.bf16 %v514_v52, %v514_v52  ;;  %v316_v61 = vadd.f32 %v822_v57, %v1059_v47  ;;  %v517_v62 = vadd.f32 %v842_v58, %v1064_v48  ;;  %v307_v63 = vpop.f32.mrb[11].mxu1  ;;  %v508_v0 = vpop.f32.mrb[11].mxu0 }
  0xf1   :  { %v733_v1 = vpack.c.bf16 %v305_v55, %v305_v55  ;;  %v749_v2 = vpack.c.bf16 %v506_v56, %v506_v56  ;;  %v308_v3 = vadd.f32 %v1059_v47, %v307_v63  ;;  %v509_v4 = vadd.f32 %v1064_v48, %v508_v0 }
  0xf2   :  { %434 = vst.msk [vmem:[%s1234_s8 + $0x8] sm:$0xf] %vm431_vm1, %v735_v59  ;;  %634 = vst.msk [vmem:[%s1235_s9 + $0x8] sm:$0xf] %vm431_vm1, %v751_v60  ;;  %v736_v5 = vpack.c.bf16 %v316_v61, %v316_v61  ;;  %v752_v6 = vpack.c.bf16 %v517_v62, %v517_v62 }
  0xf3   :  { %432 = vst.msk [vmem:[%s1234_s8] sm:$0xf] %vm431_vm1, %v733_v1  ;;  %632 = vst.msk [vmem:[%s1235_s9] sm:$0xf] %vm431_vm1, %v749_v2  ;;  %v734_v7 = vpack.c.bf16 %v308_v3, %v308_v3  ;;  %v750_v8 = vpack.c.bf16 %v509_v4, %v509_v4 }
  0xf4   :  { %435 = vst.msk [vmem:[%s1234_s8 + $0xc] sm:$0xf] %vm431_vm1, %v736_v5  ;;  %635 = vst.msk [vmem:[%s1235_s9 + $0xc] sm:$0xf] %vm431_vm1, %v752_v6 }
  0xf5   :  { %433 = vst.msk [vmem:[%s1234_s8 + $0x4] sm:$0xf] %vm431_vm1, %v734_v7  ;;  %633 = vst.msk [vmem:[%s1235_s9 + $0x4] sm:$0xf] %vm431_vm1, %v750_v8  ;;  %v825_v9 = vpop.f32.mrb[12].mxu1  ;;  %v845_v10 = vpop.f32.mrb[12].mxu0 }
  0xf6   :  { %v329_v11 = vadd.f32 %v825_v9, %v1059_v47  ;;  %v530_v12 = vadd.f32 %v845_v10, %v1064_v48  ;;  %v320_v13 = vpop.f32.mrb[13].mxu1  ;;  %v521_v14 = vpop.f32.mrb[13].mxu0 }
  0xf7   :  { %v321_v15 = vadd.f32 %v1059_v47, %v320_v13  ;;  %v522_v16 = vadd.f32 %v1064_v48, %v521_v14  ;;  %v826_v17 = vpop.f32.mrb[14].mxu1  ;;  %v846_v18 = vpop.f32.mrb[14].mxu0 }
  0xf8   :  { %v739_v19 = vpack.c.bf16 %v329_v11, %v329_v11  ;;  %v755_v20 = vpack.c.bf16 %v530_v12, %v530_v12  ;;  %v332_v21 = vadd.f32 %v826_v17, %v1059_v47  ;;  %v533_v22 = vadd.f32 %v846_v18, %v1064_v48  ;;  %v323_v23 = vpop.f32.mrb[15].mxu1  ;;  %v524_v24 = vpop.f32.mrb[15].mxu0 }
  0xf9   :  { %v737_v25 = vpack.c.bf16 %v321_v15, %v321_v15  ;;  %v753_v26 = vpack.c.bf16 %v522_v16, %v522_v16  ;;  %v324_v27 = vadd.f32 %v1059_v47, %v323_v23  ;;  %v525_v28 = vadd.f32 %v1064_v48, %v524_v24 }
  0xfa   :  { %438 = vst.msk [vmem:[%s1234_s8 + $0x18] sm:$0xf] %vm431_vm1, %v739_v19  ;;  %638 = vst.msk [vmem:[%s1235_s9 + $0x18] sm:$0xf] %vm431_vm1, %v755_v20  ;;  %v740_v29 = vpack.c.bf16 %v332_v21, %v332_v21  ;;  %v756_v30 = vpack.c.bf16 %v533_v22, %v533_v22 }
  0xfb   :  { %436 = vst.msk [vmem:[%s1234_s8 + $0x10] sm:$0xf] %vm431_vm1, %v737_v25  ;;  %636 = vst.msk [vmem:[%s1235_s9 + $0x10] sm:$0xf] %vm431_vm1, %v753_v26  ;;  %v738_v31 = vpack.c.bf16 %v324_v27, %v324_v27  ;;  %v754_v32 = vpack.c.bf16 %v525_v28, %v525_v28 }
  0xfc   :  { %439 = vst.msk [vmem:[%s1234_s8 + $0x1c] sm:$0xf] %vm431_vm1, %v740_v29  ;;  %639 = vst.msk [vmem:[%s1235_s9 + $0x1c] sm:$0xf] %vm431_vm1, %v756_v30 }
  0xfd   :  { %437 = vst.msk [vmem:[%s1234_s8 + $0x14] sm:$0xf] %vm431_vm1, %v738_v31  ;;  %637 = vst.msk [vmem:[%s1235_s9 + $0x14] sm:$0xf] %vm431_vm1, %v754_v32  ;;  %v829_v33 = vpop.f32.mrb[16].mxu1  ;;  %v849_v34 = vpop.f32.mrb[16].mxu0 }
  0xfe   :  { %v345_v35 = vadd.f32 %v829_v33, %v1059_v47  ;;  %v546_v36 = vadd.f32 %v849_v34, %v1064_v48  ;;  %v336_v37 = vpop.f32.mrb[17].mxu1  ;;  %v537_v38 = vpop.f32.mrb[17].mxu0 }
  0xff   :  { %v337_v39 = vadd.f32 %v1059_v47, %v336_v37  ;;  %v538_v40 = vadd.f32 %v1064_v48, %v537_v38  ;;  %v830_v41 = vpop.f32.mrb[18].mxu1  ;;  %v850_v42 = vpop.f32.mrb[18].mxu0 }
 0x100   :  { %v743_v43 = vpack.c.bf16 %v345_v35, %v345_v35  ;;  %v759_v44 = vpack.c.bf16 %v546_v36, %v546_v36  ;;  %v348_v45 = vadd.f32 %v830_v41, %v1059_v47  ;;  %v549_v46 = vadd.f32 %v850_v42, %v1064_v48  ;;  %v339_v49 = vpop.f32.mrb[19].mxu1  ;;  %v540_v50 = vpop.f32.mrb[19].mxu0 }
 0x101   :  { %v741_v51 = vpack.c.bf16 %v337_v39, %v337_v39  ;;  %v757_v52 = vpack.c.bf16 %v538_v40, %v538_v40  ;;  %v340_v53 = vadd.f32 %v1059_v47, %v339_v49  ;;  %v541_v54 = vadd.f32 %v1064_v48, %v540_v50 }
 0x102   :  { %442 = vst.msk [vmem:[%s1234_s8 + $0x28] sm:$0xf] %vm431_vm1, %v743_v43  ;;  %642 = vst.msk [vmem:[%s1235_s9 + $0x28] sm:$0xf] %vm431_vm1, %v759_v44  ;;  %v744_v55 = vpack.c.bf16 %v348_v45, %v348_v45  ;;  %v760_v56 = vpack.c.bf16 %v549_v46, %v549_v46 }
 0x103   :  { %440 = vst.msk [vmem:[%s1234_s8 + $0x20] sm:$0xf] %vm431_vm1, %v741_v51  ;;  %640 = vst.msk [vmem:[%s1235_s9 + $0x20] sm:$0xf] %vm431_vm1, %v757_v52  ;;  %v742_v57 = vpack.c.bf16 %v340_v53, %v340_v53  ;;  %v758_v58 = vpack.c.bf16 %v541_v54, %v541_v54 }
 0x104   :  { %443 = vst.msk [vmem:[%s1234_s8 + $0x2c] sm:$0xf] %vm431_vm1, %v744_v55  ;;  %643 = vst.msk [vmem:[%s1235_s9 + $0x2c] sm:$0xf] %vm431_vm1, %v760_v56 }
 0x105   :  { %441 = vst.msk [vmem:[%s1234_s8 + $0x24] sm:$0xf] %vm431_vm1, %v742_v57  ;;  %641 = vst.msk [vmem:[%s1235_s9 + $0x24] sm:$0xf] %vm431_vm1, %v758_v58  ;;  %v833_v59 = vpop.f32.mrb[20].mxu1  ;;  %v853_v60 = vpop.f32.mrb[20].mxu0 }
 0x106   :  { %v361_v61 = vadd.f32 %v833_v59, %v1059_v47  ;;  %v562_v62 = vadd.f32 %v853_v60, %v1064_v48  ;;  %v352_v63 = vpop.f32.mrb[21].mxu1  ;;  %v553_v0 = vpop.f32.mrb[21].mxu0 }
 0x107   :  { %v353_v1 = vadd.f32 %v1059_v47, %v352_v63  ;;  %v554_v2 = vadd.f32 %v1064_v48, %v553_v0  ;;  %v834_v3 = vpop.f32.mrb[22].mxu1  ;;  %v854_v4 = vpop.f32.mrb[22].mxu0 }
 0x108   :  { %v747_v5 = vpack.c.bf16 %v361_v61, %v361_v61  ;;  %v763_v6 = vpack.c.bf16 %v562_v62, %v562_v62  ;;  %v364_v7 = vadd.f32 %v834_v3, %v1059_v47  ;;  %v565_v8 = vadd.f32 %v854_v4, %v1064_v48  ;;  %v355_v9 = vpop.f32.mrb[23].mxu1  ;;  %v556_v10 = vpop.f32.mrb[23].mxu0 }
 0x109   :  { %v745_v11 = vpack.c.bf16 %v353_v1, %v353_v1  ;;  %v761_v12 = vpack.c.bf16 %v554_v2, %v554_v2  ;;  %v356_v13 = vadd.f32 %v1059_v47, %v355_v9  ;;  %v557_v14 = vadd.f32 %v1064_v48, %v556_v10 }
 0x10a   :  { %446 = vst.msk [vmem:[%s1234_s8 + $0x38] sm:$0xf] %vm431_vm1, %v747_v5  ;;  %646 = vst.msk [vmem:[%s1235_s9 + $0x38] sm:$0xf] %vm431_vm1, %v763_v6  ;;  %v748_v15 = vpack.c.bf16 %v364_v7, %v364_v7  ;;  %v764_v16 = vpack.c.bf16 %v565_v8, %v565_v8 }
 0x10b   :  { %444 = vst.msk [vmem:[%s1234_s8 + $0x30] sm:$0xf] %vm431_vm1, %v745_v11  ;;  %644 = vst.msk [vmem:[%s1235_s9 + $0x30] sm:$0xf] %vm431_vm1, %v761_v12  ;;  %v746_v47 = vpack.c.bf16 %v356_v13, %v356_v13  ;;  %v762_v48 = vpack.c.bf16 %v557_v14, %v557_v14 }
 0x10c   :  { %447 = vst.msk [vmem:[%s1234_s8 + $0x3c] sm:$0xf] %vm431_vm1, %v748_v15  ;;  %647 = vst.msk [vmem:[%s1235_s9 + $0x3c] sm:$0xf] %vm431_vm1, %v764_v16 }
 0x10d   :  { %445 = vst.msk [vmem:[%s1234_s8 + $0x34] sm:$0xf] %vm431_vm1, %v746_v47  ;;  %645 = vst.msk [vmem:[%s1235_s9 + $0x34] sm:$0xf] %vm431_vm1, %v762_v48 }

</bundles_post_ra>
